<compile_context>
chip_gen: v5e
topology: v5e:2x2
jax: 0.10.0
libtpu: 0.0.40
codegen_flags: <defaults>
</compile_context>

<pallas_src>
import functools

import jax
import jax.numpy as jnp
from jax.experimental import pallas as pl
from jax.experimental.pallas import tpu as pltpu


def _round_up(x, m):
    return ((x + m - 1) // m) * m


def _decoder_kernel(pad_id, h_ref, w_ref, b_ref, mask_ref, labels_ref,
                    prob_ref, lnum_ref, lden_ref):
    # h_ref:      (TILE_N, H)  compute dtype (bf16), streamed
    # w_ref:      (H, K)       compute dtype (bf16), resident across the grid
    # b_ref:      (1, K)       f32, resident
    # mask_ref:   (TILE_N, 1)  f32 (1.0 = real token, 0.0 = pad)
    # labels_ref: (TILE_N, 1)  i32
    # prob_ref:   (TILE_N, K)  f32
    # lnum_ref:   (1, 1)       f32  running sum of NLL over valid tokens (accumulator)
    # lden_ref:   (1, 1)       f32  running count of valid tokens (accumulator)

    @pl.when(pl.program_id(0) == 0)
    def _init():
        lnum_ref[...] = jnp.zeros_like(lnum_ref)
        lden_ref[...] = jnp.zeros_like(lden_ref)

    # Linear: logits = hiddens @ W + b   (MXU, f32 accumulation from bf16 inputs)
    logits = jnp.dot(h_ref[...], w_ref[...],
                     preferred_element_type=jnp.float32) + b_ref[...]

    # Pad-position penalty. PyTorch does logits += (1-mask) * -1e32 (a uniform shift
    # over the tag axis -> softmax becomes uniform 1/K there). A select to a finite
    # sentinel has identical softmax / CE semantics and avoids -inf/NaN overflow risk.
    mask = mask_ref[...]                                         # (TILE_N, 1)
    logits = jnp.where(mask > 0.0, logits, jnp.float32(-1e30))   # (TILE_N, K)

    # softmax over the tag (lane) axis; reciprocal goes to the otherwise-idle EUP slot.
    m = jnp.max(logits, axis=-1, keepdims=True)
    e = jnp.exp(logits - m)
    s = jnp.sum(e, axis=-1, keepdims=True)
    prob_ref[...] = (e * pl.reciprocal(s, approx=True)).astype(prob_ref.dtype)

    # Cross-entropy pieces, reduced in-kernel into scalar accumulators.
    labels = labels_ref[...]                                     # (TILE_N, 1) i32
    ids = jax.lax.broadcasted_iota(jnp.int32, logits.shape, 1)   # tag ids on lanes
    logit_at_label = jnp.sum(jnp.where(ids == labels, logits, 0.0),
                             axis=-1, keepdims=True)             # (TILE_N, 1)
    logsumexp = m + jnp.log(s)
    nll = logsumexp - logit_at_label                             # (TILE_N, 1)
    valid = (labels != pad_id).astype(jnp.float32)               # (TILE_N, 1)
    lnum_ref[...] += jnp.sum(nll * valid, axis=0, keepdims=True)  # (1, 1)
    lden_ref[...] += jnp.sum(valid, axis=0, keepdims=True)        # (1, 1)


def tagging_fnn_decoder(hiddens, mask, weight, bias, labels=None, pad_id=0,
                        tile_n=512, compute_dtype=jnp.bfloat16):
    """hiddens: (B, T, H); mask: (B, T) {0,1}; weight: (H, K); bias: (K,);
    labels: optional (B, T) int. Returns (prob,) or (prob, loss)."""
    B, T, H = hiddens.shape
    K = weight.shape[1]
    N = B * T

    # Token-axis tiling: largest tile <= tile_n that is a multiple of 8; pad N up
    # to a multiple of the tile so every grid step sees a full block.
    tile_n = max(8, min(tile_n, _round_up(N, 8)))
    n_pad = _round_up(N, tile_n)

    h2 = hiddens.reshape(N, H).astype(compute_dtype)     # halves HBM read vs f32
    w2 = weight.astype(compute_dtype)
    b2 = bias.reshape(1, K).astype(jnp.float32)
    m2 = mask.reshape(N, 1).astype(jnp.float32)
    if labels is None:
        lab2 = jnp.full((N, 1), pad_id, jnp.int32)
    else:
        lab2 = labels.reshape(N, 1).astype(jnp.int32)

    if n_pad != N:
        pad = n_pad - N
        h2 = jnp.pad(h2, ((0, pad), (0, 0)))
        m2 = jnp.pad(m2, ((0, pad), (0, 0)))                              # mask=0 -> penalized
        lab2 = jnp.pad(lab2, ((0, pad), (0, 0)), constant_values=pad_id)  # ignored in loss

    kernel = functools.partial(_decoder_kernel, pad_id)
    grid = (pl.cdiv(n_pad, tile_n),)

    prob2, lnum, lden = pl.pallas_call(
        kernel,
        out_shape=(
            jax.ShapeDtypeStruct((n_pad, K), jnp.float32),
            jax.ShapeDtypeStruct((1, 1), jnp.float32),
            jax.ShapeDtypeStruct((1, 1), jnp.float32),
        ),
        grid=grid,
        in_specs=[
            pl.BlockSpec((tile_n, H), lambda i: (i, 0)),   # hiddens: streamed tiles
            pl.BlockSpec((H, K), lambda i: (0, 0)),        # weight: resident (DMA'd once)
            pl.BlockSpec((1, K), lambda i: (0, 0)),        # bias:   resident
            pl.BlockSpec((tile_n, 1), lambda i: (i, 0)),   # mask
            pl.BlockSpec((tile_n, 1), lambda i: (i, 0)),   # labels
        ],
        out_specs=(
            pl.BlockSpec((tile_n, K), lambda i: (i, 0)),   # prob
            pl.BlockSpec((1, 1), lambda i: (0, 0)),        # loss numerator accumulator
            pl.BlockSpec((1, 1), lambda i: (0, 0)),        # valid-token count accumulator
        ),
        compiler_params=pltpu.CompilerParams(
            # the token axis carries the resident loss accumulators -> reduction axis
            dimension_semantics=("arbitrary",)),
    )(h2, w2, b2, m2, lab2)

    prob = prob2[:N].reshape(B, T, K)
    if labels is None:
        return (prob,)
    # CrossEntropyLoss(ignore_index=pad_id): mean over non-ignored tokens.
    # (NaN if every token is ignored -- same behavior as PyTorch.)
    loss = lnum[0, 0] / lden[0, 0]
    return (prob, loss)


if __name__ == "__main__":
    # small shapes consistent with the module: batch=2, seq=8, hidden=32, tags=16
    B, T, H, K = 2, 8, 32, 16
    PAD_ID = 0

    key = jax.random.PRNGKey(0)
    k_h, k_w, k_b, k_lab = jax.random.split(key, 4)

    hiddens = jax.random.normal(k_h, (B, T, H), dtype=jnp.float32)

    # deterministic parameter init (PyTorch nn.Linear-style uniform bound 1/sqrt(H))
    bound = 1.0 / jnp.sqrt(jnp.float32(H))
    weight = jax.random.uniform(k_w, (H, K), jnp.float32, -bound, bound)
    bias = jax.random.uniform(k_b, (K,), jnp.float32, -bound, bound)

    # mask: first `len_b` positions real, rest padded
    lengths = jnp.array([6, 8], dtype=jnp.int32)
    pos = jnp.arange(T)[None, :]
    mask = (pos < lengths[:, None]).astype(jnp.float32)

    # labels: random tags on real positions, pad_id on padded positions
    labels = jax.random.randint(k_lab, (B, T), 1, K).astype(jnp.int32)
    labels = jnp.where(mask > 0, labels, PAD_ID)

    prob, loss = tagging_fnn_decoder(hiddens, mask, weight, bias,
                                     labels=labels, pad_id=PAD_ID)
    jax.block_until_ready(prob)
    jax.block_until_ready(loss)

    # pure-JAX f32 reference (kernel matmul runs in bf16 -> loose tolerances)
    logits_ref = hiddens @ weight + bias
    logits_ref = logits_ref + (1.0 - mask)[..., None] * jnp.float32(-1e32)
    prob_ref = jax.nn.softmax(logits_ref, axis=-1)
    lse = jax.nn.logsumexp(logits_ref, axis=-1)
    nll_ref = lse - jnp.take_along_axis(logits_ref, labels[..., None], axis=-1)[..., 0]
    valid_ref = (labels != PAD_ID).astype(jnp.float32)
    loss_ref = jnp.sum(nll_ref * valid_ref) / jnp.sum(valid_ref)

    assert prob.shape == (B, T, K)
    assert bool(jnp.isfinite(loss))
    assert jnp.allclose(prob, prob_ref, atol=5e-2)
    assert jnp.allclose(loss, loss_ref, rtol=5e-2, atol=5e-2)
    print("KERNEL_OK")
</pallas_src>

<mosaic_0001>
module attributes {stable_mosaic.version = 11 : i64} {
  func.func @_decoder_kernel(%arg0: i32, %arg1: memref<16x32xbf16, #tpu.memory_space<vmem>>, %arg2: memref<32x16xbf16, #tpu.memory_space<vmem>>, %arg3: memref<1x16xf32, #tpu.memory_space<vmem>>, %arg4: memref<16x1xf32, #tpu.memory_space<vmem>>, %arg5: memref<16x1xi32, #tpu.memory_space<vmem>>, %arg6: memref<16x16xf32, #tpu.memory_space<vmem>>, %arg7: memref<1x1xf32, #tpu.memory_space<vmem>>, %arg8: memref<1x1xf32, #tpu.memory_space<vmem>>) attributes {dimension_semantics = [#tpu.dimension_semantics<arbitrary>], iteration_bounds = array<i64: 1>, scalar_prefetch = 0 : i64, scratch_operands = 0 : i64, tpu.core_type = #tpu.core_type<tc>, window_params = [{transform_indices = @transform_0, window_bounds = array<i64: 16, 32>}, {pipeline_mode = #tpu.pipeline_mode<synchronous>, transform_indices = @transform_1, window_bounds = array<i64: 32, 16>}, {pipeline_mode = #tpu.pipeline_mode<synchronous>, transform_indices = @transform_2, window_bounds = array<i64: 1, 16>}, {transform_indices = @transform_3, window_bounds = array<i64: 16, 1>}, {transform_indices = @transform_4, window_bounds = array<i64: 16, 1>}, {transform_indices = @transform_5, window_bounds = array<i64: 16, 16>}, {pipeline_mode = #tpu.pipeline_mode<synchronous>, transform_indices = @transform_6, window_bounds = array<i64: 1, 1>}, {pipeline_mode = #tpu.pipeline_mode<synchronous>, transform_indices = @transform_7, window_bounds = array<i64: 1, 1>}]} {
    %c0_i32 = arith.constant 0 : i32
    %0 = arith.cmpi eq, %arg0, %c0_i32 : i32
    %1 = arith.extui %0 : i1 to i32
    %c0_i32_0 = arith.constant 0 : i32
    %2 = arith.cmpi ne, %1, %c0_i32_0 : i32
    scf.if %2 {
      %cst_29 = arith.constant 0.000000e+00 : f32
      %53 = vector.broadcast %cst_29 : f32 to vector<1x1xf32>
      %c0_30 = arith.constant 0 : index
      %c0_31 = arith.constant 0 : index
      %54 = vector.load %arg7[%c0_30, %c0_31] : memref<1x1xf32, #tpu.memory_space<vmem>>, vector<1x1xf32>
      tpu.vector_store %arg7[%c0_30, %c0_31], %53 {strides = array<i32>} : memref<1x1xf32, #tpu.memory_space<vmem>>, vector<1x1xf32>,
      %cst_32 = arith.constant 0.000000e+00 : f32
      %55 = vector.broadcast %cst_32 : f32 to vector<1x1xf32>
      %c0_33 = arith.constant 0 : index
      %c0_34 = arith.constant 0 : index
      %56 = vector.load %arg8[%c0_33, %c0_34] : memref<1x1xf32, #tpu.memory_space<vmem>>, vector<1x1xf32>
      tpu.vector_store %arg8[%c0_33, %c0_34], %55 {strides = array<i32>} : memref<1x1xf32, #tpu.memory_space<vmem>>, vector<1x1xf32>,
    } else {
    }
    %c0 = arith.constant 0 : index
    %c0_1 = arith.constant 0 : index
    %3 = vector.load %arg1[%c0, %c0_1] : memref<16x32xbf16, #tpu.memory_space<vmem>>, vector<16x32xbf16>
    %c0_2 = arith.constant 0 : index
    %c0_3 = arith.constant 0 : index
    %4 = vector.load %arg2[%c0_2, %c0_3] : memref<32x16xbf16, #tpu.memory_space<vmem>>, vector<32x16xbf16>
    %cst = arith.constant dense<0.000000e+00> : vector<16x16xf32>
    %5 = tpu.matmul %3, %4, %cst {dimension_numbers = #tpu.dot_dimension_numbers<[1], [0], [0], [1], [0, 0, 1, 1], [], []>} : vector<16x32xbf16>, vector<32x16xbf16>, vector<16x16xf32> -> vector<16x16xf32>
    %c0_4 = arith.constant 0 : index
    %c0_5 = arith.constant 0 : index
    %6 = vector.load %arg3[%c0_4, %c0_5] : memref<1x16xf32, #tpu.memory_space<vmem>>, vector<1x16xf32>
    %7 = vector.broadcast %6 : vector<1x16xf32> to vector<16x16xf32>
    %8 = arith.addf %5, %7 : vector<16x16xf32>
    %c0_6 = arith.constant 0 : index
    %c0_7 = arith.constant 0 : index
    %9 = vector.load %arg4[%c0_6, %c0_7] : memref<16x1xf32, #tpu.memory_space<vmem>>, vector<16x1xf32>
    %cst_8 = arith.constant 0.000000e+00 : f32
    %10 = vector.broadcast %cst_8 : f32 to vector<16x1xf32>
    %11 = arith.cmpf ogt, %9, %10 : vector<16x1xf32>
    %cst_9 = arith.constant -1.000000e+30 : f32
    %12 = vector.shape_cast %11 : vector<16x1xi1> to vector<16x1xi1>
    %13 = vector.broadcast %12 : vector<16x1xi1> to vector<16x16xi1>
    %14 = vector.broadcast %cst_9 : f32 to vector<16x16xf32>
    %15 = arith.select %13, %8, %14 : vector<16x16xi1>, vector<16x16xf32>
    %cst_10 = arith.constant dense<0xFF800000> : vector<16xf32>
    %16 = vector.multi_reduction <maximumf>, %15, %cst_10 [1] : vector<16x16xf32> to vector<16xf32>
    %17 = vector.shape_cast %16 : vector<16xf32> to vector<16x1xf32>
    %18 = vector.broadcast %17 : vector<16x1xf32> to vector<16x16xf32>
    %19 = arith.subf %15, %18 : vector<16x16xf32>
    %20 = math.exp %19 : vector<16x16xf32>
    %cst_11 = arith.constant dense<0.000000e+00> : vector<16xf32>
    %21 = vector.multi_reduction <add>, %20, %cst_11 [1] : vector<16x16xf32> to vector<16xf32>
    %22 = vector.shape_cast %21 : vector<16xf32> to vector<16x1xf32>
    %23 = tpu.reciprocal %22 {approx = true} : vector<16x1xf32> -> vector<16x1xf32>
    %24 = vector.broadcast %23 : vector<16x1xf32> to vector<16x16xf32>
    %25 = arith.mulf %20, %24 : vector<16x16xf32>
    %c0_12 = arith.constant 0 : index
    %c0_13 = arith.constant 0 : index
    %26 = vector.load %arg6[%c0_12, %c0_13] : memref<16x16xf32, #tpu.memory_space<vmem>>, vector<16x16xf32>
    tpu.vector_store %arg6[%c0_12, %c0_13], %25 {strides = array<i32>} : memref<16x16xf32, #tpu.memory_space<vmem>>, vector<16x16xf32>,
    %c0_14 = arith.constant 0 : index
    %c0_15 = arith.constant 0 : index
    %27 = vector.load %arg5[%c0_14, %c0_15] : memref<16x1xi32, #tpu.memory_space<vmem>>, vector<16x1xi32>
    %28 = tpu.iota {dimensions = array<i32: 1>} : vector<16x16xi32>
    %29 = vector.broadcast %27 : vector<16x1xi32> to vector<16x16xi32>
    %30 = arith.cmpi eq, %28, %29 : vector<16x16xi32>
    %cst_16 = arith.constant 0.000000e+00 : f32
    %31 = vector.broadcast %cst_16 : f32 to vector<16x16xf32>
    %32 = arith.select %30, %15, %31 : vector<16x16xi1>, vector<16x16xf32>
    %cst_17 = arith.constant dense<0.000000e+00> : vector<16xf32>
    %33 = vector.multi_reduction <add>, %32, %cst_17 [1] : vector<16x16xf32> to vector<16xf32>
    %34 = vector.shape_cast %33 : vector<16xf32> to vector<16x1xf32>
    %35 = math.log %22 : vector<16x1xf32>
    %36 = arith.addf %17, %35 : vector<16x1xf32>
    %37 = arith.subf %36, %34 : vector<16x1xf32>
    %c0_i32_18 = arith.constant 0 : i32
    %38 = vector.broadcast %c0_i32_18 : i32 to vector<16x1xi32>
    %39 = arith.cmpi ne, %27, %38 : vector<16x1xi32>
    %40 = arith.extui %39 : vector<16x1xi1> to vector<16x1xi32>
    %41 = arith.sitofp %40 : vector<16x1xi32> to vector<16x1xf32>
    %c0_19 = arith.constant 0 : index
    %c0_20 = arith.constant 0 : index
    %42 = vector.load %arg7[%c0_19, %c0_20] : memref<1x1xf32, #tpu.memory_space<vmem>>, vector<1x1xf32>
    %43 = arith.mulf %37, %41 : vector<16x1xf32>
    %cst_21 = arith.constant dense<0.000000e+00> : vector<1xf32>
    %44 = vector.multi_reduction <add>, %43, %cst_21 [0] : vector<16x1xf32> to vector<1xf32>
    %45 = vector.shape_cast %44 : vector<1xf32> to vector<1x1xf32>
    %46 = arith.addf %42, %45 : vector<1x1xf32>
    %c0_22 = arith.constant 0 : index
    %c0_23 = arith.constant 0 : index
    %47 = vector.load %arg7[%c0_22, %c0_23] : memref<1x1xf32, #tpu.memory_space<vmem>>, vector<1x1xf32>
    tpu.vector_store %arg7[%c0_22, %c0_23], %46 {strides = array<i32>} : memref<1x1xf32, #tpu.memory_space<vmem>>, vector<1x1xf32>,
    %c0_24 = arith.constant 0 : index
    %c0_25 = arith.constant 0 : index
    %48 = vector.load %arg8[%c0_24, %c0_25] : memref<1x1xf32, #tpu.memory_space<vmem>>, vector<1x1xf32>
    %cst_26 = arith.constant dense<0.000000e+00> : vector<1xf32>
    %49 = vector.multi_reduction <add>, %41, %cst_26 [0] : vector<16x1xf32> to vector<1xf32>
    %50 = vector.shape_cast %49 : vector<1xf32> to vector<1x1xf32>
    %51 = arith.addf %48, %50 : vector<1x1xf32>
    %c0_27 = arith.constant 0 : index
    %c0_28 = arith.constant 0 : index
    %52 = vector.load %arg8[%c0_27, %c0_28] : memref<1x1xf32, #tpu.memory_space<vmem>>, vector<1x1xf32>
    tpu.vector_store %arg8[%c0_27, %c0_28], %51 {strides = array<i32>} : memref<1x1xf32, #tpu.memory_space<vmem>>, vector<1x1xf32>,
    return
  }
  func.func @transform_0(%arg0: i32) -> (i32, i32) {
    %c0_i32 = arith.constant 0 : i32
    %c0_i32_0 = arith.constant 0 : i32
    return %arg0, %c0_i32 : i32, i32
  }
  func.func @transform_1(%arg0: i32) -> (i32, i32) {
    %c0_i32 = arith.constant 0 : i32
    %c0_i32_0 = arith.constant 0 : i32
    %c0_i32_1 = arith.constant 0 : i32
    return %c0_i32, %c0_i32_0 : i32, i32
  }
  func.func @transform_2(%arg0: i32) -> (i32, i32) {
    %c0_i32 = arith.constant 0 : i32
    %c0_i32_0 = arith.constant 0 : i32
    %c0_i32_1 = arith.constant 0 : i32
    return %c0_i32, %c0_i32_0 : i32, i32
  }
  func.func @transform_3(%arg0: i32) -> (i32, i32) {
    %c0_i32 = arith.constant 0 : i32
    %c0_i32_0 = arith.constant 0 : i32
    return %arg0, %c0_i32 : i32, i32
  }
  func.func @transform_4(%arg0: i32) -> (i32, i32) {
    %c0_i32 = arith.constant 0 : i32
    %c0_i32_0 = arith.constant 0 : i32
    return %arg0, %c0_i32 : i32, i32
  }
  func.func @transform_5(%arg0: i32) -> (i32, i32) {
    %c0_i32 = arith.constant 0 : i32
    %c0_i32_0 = arith.constant 0 : i32
    return %arg0, %c0_i32 : i32, i32
  }
  func.func @transform_6(%arg0: i32) -> (i32, i32) {
    %c0_i32 = arith.constant 0 : i32
    %c0_i32_0 = arith.constant 0 : i32
    %c0_i32_1 = arith.constant 0 : i32
    return %c0_i32, %c0_i32_0 : i32, i32
  }
  func.func @transform_7(%arg0: i32) -> (i32, i32) {
    %c0_i32 = arith.constant 0 : i32
    %c0_i32_0 = arith.constant 0 : i32
    %c0_i32_1 = arith.constant 0 : i32
    return %c0_i32, %c0_i32_0 : i32, i32
  }
}

</mosaic_0001>

<bundles_post_ra>
// kernel: tpu_custom_call.1
= control target key start
LH: loop header
LB: loop body
LE: loop exit
PB: predicated region body
PF: predicated region fallthrough
CT: control target
= control target key end

     0   :  { %13 = vsyncpa [#allocation3], 0  ;;  %v346_v1 = vmov 0   ;;  %s446_s0 = inlined_call_operand.vmem [shape: bf16[16,32], index: 0, kind: input, shape index: {}]   ;;  %s447_s1 = inlined_call_operand.vmem [shape: bf16[32,16], index: 1, kind: input, shape index: {}]   ;;  %s448_s2 = inlined_call_operand.vmem [shape: f32[1,16], index: 2, kind: input, shape index: {}]   ;;  %s449_s3 = inlined_call_operand.vmem [shape: f32[16,1], index: 3, kind: input, shape index: {}]   ;;  %s450_s4 = inlined_call_operand.vmem [shape: s32[16,1], index: 4, kind: input, shape index: {}]   ;;  %s451_s5 = inlined_call_operand.hbm [shape: f32[16,16], index: 5, kind: output, shape index: {0}]   ;;  %s452_s6 = inlined_call_operand.hbm [shape: f32[1,1], index: 6, kind: output, shape index: {1}]   ;;  %s453_s7 = inlined_call_operand.hbm [shape: f32[1,1], index: 7, kind: output, shape index: {2}]  }
   0x1   :  { %v247_v0 = vld [vmem:[%s447_s1 + $0x8] sm:$0xff]  ;;  %255 = vset.pattern.permute.xlu0 %v346_v1  ;;  %v78_v2 = vld [vmem:[%s449_s3] sm:$0xff]  ;;  %256 = vset.pattern.permute.xlu2 %v346_v1 }
   0x2   :  { %v402_v3 = vld [vmem:[%s450_s4] sm:$0xff]  ;;  %70 = vmatpush.bf16.msra.mxu0 %v247_v0  ;;  %vm80_vm0 = vcmp.gt.f32.partialorder %v78_v2, 0.0  ;;  %v79_v6 = vld [vmem:[%s449_s3 + $0x8] sm:$0xff] }
   0x3   :  { %v246_v4 = vld [vmem:[%s447_s1] sm:$0xff]  ;;  %124 = vperm.xlu2 %256, %v402_v3   ;;  %v82_v5 = vsel %vm80_vm0, 1, %v346_v1 }
   0x4   :  { %14 = vsyncpa [#allocation5], 0  ;;  %85 = vperm.xlu0 %255, %v82_v5   ;;  %v245_v7 = vld [vmem:[%s446_s0] sm:$0xff]  ;;  %vm60_vm1 = vcmask 261120   ;;  %vm81_vm2 = vcmp.gt.f32.partialorder %v79_v6, 0.0  ;;  %v120_v8 = vld [vmem:[%s450_s4 + $0x8] sm:$0xff]  ;;  %v121_v10 = vlaneseq }
   0x5   :  { %v83_v9 = vsel %vm81_vm2, 1, %v346_v1  ;;  %v257_v12 = vld [vmem:[%s448_s2] ss:$0 sm:$0xff]  ;;  %vm94_vm5 = vcmask 130048   ;;  %vm147_vm8 = vcmp.ne.s32.totalorder %v402_v3, 0  ;;  %vm148_vm9 = vcmp.ne.s32.totalorder %v120_v8, 0 }
   0x6   :  { %71 = vmatpush.bf16.msra.mxu0 %v246_v4  ;;  %v122_v13 = vand.u32 127, %v121_v10  ;;  %vm156_vm10 = vcmask 7168   ;;  %v347_v39 = vmov 0.0   ;;  %vm30_vm11 = vcmask 0   ;;  %s348_s0 = smov [#allocation2]   ;;  %s187_s16 = sshll.u32 %s451_s5, 4  ;;  %s188_s16 = int_to_ptr.hbm [resolvable:$true] %s187_s16 }
   0x7   :  { %v243_v40 = vsel %vm147_vm8, 1.0, %v347_v39  ;;  %v244_v42 = vsel %vm148_vm9, 1.0, %v347_v39  ;;  %31 = vst.msk [vmem:[#allocation4] sm:$0x1] %vm30_vm11, %v347_v39  ;;  %s185_s2 = sshll.u32 %s348_s0, 4  ;;  %s349_s17 = smov 128   ;;  %s186_s2 = int_to_ptr.vmem [resolvable:$true] %s185_s2 }
   0x8   :  { %v170_v41 = vsel %vm156_vm10, %v243_v40, 0.0  ;;  %v171_v43 = vsel %vm156_vm10, %v244_v42, 0.0  ;;  %32 = vst.msk [vmem:[#allocation6] sm:$0x1] %vm30_vm11, %v347_v39  ;;  %s350_s18 = smov 8   ;;  %s351_s5 = smov [#allocation4]  }
   0x9   :  { %242 = vmatmul.msk.bf16.vlgmr.msra.gmra.mxu0 %vm60_vm1, %v245_v7  ;;  %v172_v44 = vadd.f32 %v171_v43, %v170_v41  ;;  %s199_s19 = sshll.u32 %s351_s5, 4  ;;  %s201_s22 = sshll.u32 %s452_s6, 4  ;;  %s200_s19 = int_to_ptr.vmem [resolvable:$true] %s199_s19  ;;  %s202_s22 = int_to_ptr.hbm [resolvable:$true] %s201_s22 }
   0xa   :  { %s352_s23 = smov [#allocation6]   ;;  %s212_s27 = sshll.u32 %s453_s7, 4  ;;  %s213_s27 = int_to_ptr.hbm [resolvable:$true] %s212_s27 }
   0xb   :  { %127 = vperm.xlu2 %256, %v120_v8   ;;  %v173_v45 = vrot.slane %v172_v44, 4  ;;  %s210_s24 = sshll.u32 %s352_s23, 4  ;;  %s211_s24 = int_to_ptr.vmem [resolvable:$true] %s210_s24 }
   0xc   :  { %88 = vperm.xlu0 %255, %v83_v9  }
   0xd   :  { %v174_v46 = vadd.f32 %v173_v45, %v172_v44 }
   0xf   :  { %v175_v48 = vrot.slane %v174_v46, 2  ;;  %v169_v56 = vld [vmem:[#allocation6] sm:$0x1] }
  0x11   :  { %v176_v49 = vadd.f32 %v175_v48, %v174_v46 }
  0x13   :  { %v177_v50 = vrot.slane %v176_v49, 1 }
  0x15   :  { %v178_v52 = vadd.f32 %v177_v50, %v176_v49 }
  0x17   :  { %v179_v58 = vadd.f32 %v178_v52, %v169_v56 }
  0x19   :  { %180 = vst.msk [vmem:[#allocation6] sm:$0x1] %vm30_vm11, %v179_v58 }
  0x5d   :  { %v125_v14 = vpop.permute.xlu2 %124 }
  0x5e   :  { %vm129_vm4 = vcmp.eq.s32.totalorder %v122_v13, %v125_v14 }
  0x65   :  { %v128_v35 = vpop.permute.xlu2 %127 }
  0x66   :  { %vm130_vm7 = vcmp.eq.s32.totalorder %v122_v13, %v128_v35 }
  0x76   :  { %v86_v11 = vpop.permute.xlu0 %85 }
  0x77   :  { %vm90_vm3 = vcmp.eq.s32.totalorder %v86_v11, 1 }
  0x7e   :  { %v89_v21 = vpop.permute.xlu0 %88 }
  0x7f   :  { %vm91_vm6 = vcmp.eq.s32.totalorder %v89_v21, 1 }
  0x86   :  { %v73_v15 = vpop.f32.mrf.mxu0 }
  0x87   :  { %v74_v16 = vadd.f32 %v257_v12, %v73_v15  ;;  %v153_v15 = vld [vmem:[#allocation4] sm:$0x1] }
  0x89   :  { %v92_v17 = vsel %vm90_vm3, %v74_v16, -1e+30 }
  0x8a   :  { %v95_v18 = vsel %vm94_vm5, %v92_v17, -inf  ;;  %v131_v19 = vsel %vm129_vm4, %v92_v17, 0.0 }
  0x8b   :  { %96 = vmax.xlane.f32.xlu1 %v95_v18  ;;  %v133_v20 = vsel %vm94_vm5, %v131_v19, 0.0 }
  0x8c   :  { %134 = vadd.xlane.f32.xlu2 %v133_v20 }
  0x8e   :  { %v75_v22 = vpop.f32.mrf.mxu0 }
  0x8f   :  { %v76_v23 = vadd.f32 %v257_v12, %v75_v22 }
  0x91   :  { %v93_v24 = vsel %vm91_vm6, %v76_v23, -1e+30 }
  0x92   :  { %v98_v25 = vsel %vm94_vm5, %v93_v24, -inf  ;;  %v132_v37 = vsel %vm130_vm7, %v93_v24, 0.0 }
  0x93   :  { %99 = vmax.xlane.f32.xlu1 %v98_v25  ;;  %v136_v38 = vsel %vm94_vm5, %v132_v37, 0.0 }
  0xfe   :  { %v97_v26 = vpop.xlane.xlu1 %96 }
  0xff   :  { %v101_v27 = vsub.f32 %v92_v17, %v97_v26  ;;  %v135_v62 = vpop.xlane.xlu2 %134 }
 0x101   :  { %v103_v28 = vmul.f32 1.442695, %v101_v27 }
 0x103   :  { %258 = vpow2.f32 %v103_v28 }
 0x106   :  { %v100_v29 = vpop.xlane.xlu1 %99 }
 0x107   :  { %v102_v30 = vsub.f32 %v93_v24, %v100_v29 }
 0x109   :  { %v259_v31 = vpop.eup %258  ;;  %v105_v32 = vmul.f32 1.442695, %v102_v30 }
 0x10a   :  { %v107_v33 = vsel %vm94_vm5, %v259_v31, 0.0 }
 0x10b   :  { %260 = vpow2.f32 %v105_v32  ;;  %108 = vadd.xlane.f32.xlu0 %v107_v33 }
 0x111   :  { %v261_v34 = vpop.eup %260 }
 0x112   :  { %v110_v36 = vsel %vm94_vm5, %v261_v34, 0.0 }
 0x113   :  { %111 = vadd.xlane.f32.xlu1 %v110_v36 }
 0x11b   :  { %137 = vadd.xlane.f32.xlu1 %v136_v38 }
 0x17e   :  { %v109_v47 = vpop.xlane.xlu0 %108 }
 0x17f   :  { %262 = vrcp.f32 %v109_v47 }
 0x180   :  { %264 = vlog2.f32 %v109_v47 }
 0x185   :  { %v263_v51 = vpop.eup %262 }
 0x186   :  { %v265_v53 = vpop.eup %264  ;;  %v115_v54 = vmul.f32 %v263_v51, %v259_v31  ;;  %v112_v55 = vpop.xlane.xlu1 %111 }
 0x187   :  { %v140_v57 = vmul.f32 0.6931472, %v265_v53  ;;  %266 = vrcp.f32 %v112_v55 }
 0x188   :  { %117 = vst.msk [vmem:[#allocation2] sm:$0xff] %vm94_vm5, %v115_v54  ;;  %268 = vlog2.f32 %v112_v55 }
 0x189   :  { %v143_v59 = vadd.f32 %v140_v57, %v97_v26 }
 0x18b   :  { %v145_v0 = vsub.f32 %v143_v59, %v135_v62 }
 0x18d   :  { %v267_v60 = vpop.eup %266  ;;  %v154_v4 = vmul.f32 %v243_v40, %v145_v0 }
 0x18e   :  { %v269_v61 = vpop.eup %268  ;;  %v116_v63 = vmul.f32 %v267_v60, %v261_v34  ;;  %v138_v3 = vpop.xlane.xlu1 %137 }
 0x18f   :  { %v142_v1 = vmul.f32 0.6931472, %v269_v61  ;;  %v157_v7 = vsel %vm156_vm10, %v154_v4, 0.0 }
 0x190   :  { %118 = vst.msk [vmem:[#allocation2 + $0x8] sm:$0xff] %vm94_vm5, %v116_v63 }
 0x191   :  { %v144_v2 = vadd.f32 %v142_v1, %v100_v29  ;;  %193 = dma.vmem_to_hbm [thread:$0]  %s186_s2, 256, %s188_s16, [#allocation3], %s349_s17, %s349_s17, %s350_s18  }
 0x193   :  { %v146_v5 = vsub.f32 %v144_v2, %v138_v3 }
 0x195   :  { %v155_v6 = vmul.f32 %v244_v42, %v146_v5 }
 0x197   :  { %v158_v8 = vsel %vm156_vm10, %v155_v6, 0.0 }
 0x198   :  { %v159_v9 = vadd.f32 %v158_v8, %v157_v7 }
 0x19a   :  { %v160_v10 = vrot.slane %v159_v9, 4 }
 0x19c   :  { %v161_v11 = vadd.f32 %v160_v10, %v159_v9 }
 0x19e   :  { %v162_v12 = vrot.slane %v161_v11, 2 }
 0x1a0   :  { %v163_v13 = vadd.f32 %v162_v12, %v161_v11 }
 0x1a2   :  { %v164_v14 = vrot.slane %v163_v13, 1 }
 0x1a4   :  { %v165_v16 = vadd.f32 %v164_v14, %v163_v13 }
 0x1a6   :  { %v166_v17 = vadd.f32 %v165_v16, %v153_v15 }
 0x1a8   :  { %168 = vst.msk [vmem:[#allocation4] sm:$0x1] %vm30_vm11, %v166_v17 }
 0x1a9   :  { %204 = dma.vmem_to_hbm [thread:$0]  %s200_s19, 16, %s202_s22, [#allocation5]  }
 0x1aa   :  { %215 = dma.vmem_to_hbm [thread:$0]  %s211_s24, 16, %s213_s27, [#allocation5]  }
 0x1ab   :  { %342 = dma.done.wait [#allocation3], 256  }
 0x1ac   :  { %343 = vsyncadd [#allocation3], 4294967040 }
 0x1ad   :  { %344 = dma.done.wait [#allocation5], 32  }
 0x1ae   :  { %345 = vsyncadd [#allocation5], 4294967264 }
 0x1af   :  { %228 = vsyncpa [#allocation3], 1 }
 0x1b0   :  { %229 = vsyncpa [#allocation5], 1 }

</bundles_post_ra>
